<compile_context>
chip_gen: v6e
topology: v6e:2x2x1
jax: 0.10.0
libtpu: 0.0.40
codegen_flags: <defaults>
</compile_context>

<pallas_src>
import functools

import jax
import jax.numpy as jnp
from jax.experimental import pallas as pl
from jax.experimental.pallas import tpu as pltpu

LANES = 128
MAX_BLOCK_ROWS = 8192            # 8192*128*4B = 4 MiB per f32 input buffer
VMEM_LIMIT_BYTES = 48 * 1024 * 1024  # 16 MiB pipelined inputs + f32 temps + headroom


def _round_up(x, m):
    return ((x + m - 1) // m) * m


def _xsigmoid_partial_kernel(y_ref, yp_ref, o_ref, *, rows, row_block, need_mask):
    ey = y_ref[...].astype(jnp.float32) - yp_ref[...].astype(jnp.float32)
    # 2*ey / (1 + exp(-ey)) - ey  ==  ey * tanh(ey / 2)
    val = ey * jnp.tanh(0.5 * ey)

    def _store(v):
        # (row_block,128) -> (row_block//8, 8, 128) is tile-preserving for f32;
        # summing the leading axis is pure VPU vreg adds (no cross-sublane XLU)
        # and the (1,8,128) result is an unmasked, tile-aligned store.
        o_ref[...] = jnp.sum(v.reshape(row_block // 8, 8, LANES), axis=0,
                             keepdims=True)

    if need_mask:
        i = pl.program_id(0)
        last = pl.num_programs(0) - 1

        @pl.when(i != last)
        def _():
            _store(val)

        @pl.when(i == last)
        def _():
            # Only the last block pays the iota/compare/select: zero out rows
            # past the real row count (garbage from the edge-block DMA).
            row_idx = jax.lax.broadcasted_iota(jnp.int32, (row_block, LANES), 0)
            _store(jnp.where(i * row_block + row_idx < rows, val, 0.0))
    else:
        _store(val)


def xsigmoid_loss(y_t, y_prime_t):
    assert y_t.shape == y_prime_t.shape
    n_elems = y_t.size

    y_flat = jnp.ravel(y_t)
    yp_flat = jnp.ravel(y_prime_t)

    # Pad only to the next multiple of 128 lanes, and only when required for
    # the (rows, 128) reshape.  Zero pads contribute exactly 0 to the sum.
    lane_pad = (-n_elems) % LANES
    if lane_pad:
        y_flat = jnp.pad(y_flat, (0, lane_pad))
        yp_flat = jnp.pad(yp_flat, (0, lane_pad))
    rows = (n_elems + lane_pad) // LANES

    y2d = y_flat.reshape(rows, LANES)
    yp2d = yp_flat.reshape(rows, LANES)

    # Dtype-aware sublane tile so packed-dtype blocks stay tile-aligned.
    itemsize = max(jnp.dtype(y_t.dtype).itemsize,
                   jnp.dtype(y_prime_t.dtype).itemsize)
    sub = {4: 8, 2: 16, 1: 32}.get(int(itemsize), 8)

    if rows <= sub:
        row_block = sub                                   # single tiny (edge) block
    elif rows <= 2 * MAX_BLOCK_ROWS:
        # Split into at least 2 blocks so both v7x TensorCores get work.
        row_block = _round_up(pl.cdiv(rows, 2), sub)
    else:
        row_block = MAX_BLOCK_ROWS                        # multiple of sub
    num_blocks = pl.cdiv(rows, row_block)
    need_mask = (rows % row_block) != 0                   # last block is ragged

    kernel = functools.partial(
        _xsigmoid_partial_kernel,
        rows=rows,
        row_block=row_block,
        need_mask=need_mask,
    )

    in_bytes = n_elems * (jnp.dtype(y_t.dtype).itemsize
                          + jnp.dtype(y_prime_t.dtype).itemsize)
    cost = pl.CostEstimate(
        flops=5 * n_elems,
        transcendentals=n_elems,
        bytes_accessed=in_bytes + num_blocks * 8 * LANES * 4,
    )

    partials = pl.pallas_call(
        kernel,
        out_shape=jax.ShapeDtypeStruct((num_blocks, 8, LANES), jnp.float32),
        grid_spec=pltpu.PrefetchScalarGridSpec(
            num_scalar_prefetch=0,
            grid=(num_blocks,),
            in_specs=[
                pl.BlockSpec((row_block, LANES), lambda i: (i, 0)),
                pl.BlockSpec((row_block, LANES), lambda i: (i, 0)),
            ],
            out_specs=pl.BlockSpec((1, 8, LANES), lambda i: (i, 0, 0)),
        ),
        compiler_params=pltpu.CompilerParams(
            dimension_semantics=("parallel",),   # independent blocks -> megacore
            vmem_limit_bytes=VMEM_LIMIT_BYTES,
        ),
        cost_estimate=cost,
    )(y2d, yp2d)

    # Tiny final reduction + mean in plain JAX (divide by the ORIGINAL size).
    return jnp.sum(partials, dtype=jnp.float32) / jnp.float32(n_elems)


def _reference(y_t, y_prime_t):
    ey = y_t.astype(jnp.float32) - y_prime_t.astype(jnp.float32)
    return jnp.mean(2.0 * ey / (1.0 + jnp.exp(-ey)) - ey)


if __name__ == "__main__":
    key = jax.random.PRNGKey(0)
    k1, k2 = jax.random.split(key)
    # Small NCHW-like shapes (the loss is shape-agnostic elementwise + mean).
    shape = (2, 4, 16, 16)
    y_t = jax.random.normal(k1, shape, dtype=jnp.float32)
    y_prime_t = jax.random.normal(k2, shape, dtype=jnp.float32)

    out = xsigmoid_loss(y_t, y_prime_t)
    out = jax.block_until_ready(out)

    ref = _reference(y_t, y_prime_t)
    assert jnp.allclose(out, ref, atol=1e-5, rtol=1e-5), (out, ref)

    print("KERNEL_OK")
</pallas_src>

<mosaic_0001>
module attributes {stable_mosaic.version = 11 : i64} {
  func.func @_xsigmoid_partial_kernel(%arg0: i32, %arg1: memref<8x128xf32, #tpu.memory_space<vmem>>, %arg2: memref<8x128xf32, #tpu.memory_space<vmem>>, %arg3: memref<1x8x128xf32, #tpu.memory_space<vmem>>) attributes {dimension_semantics = [#tpu.dimension_semantics<parallel>], iteration_bounds = array<i64: 2>, scalar_prefetch = 0 : i64, scratch_operands = 0 : i64, tpu.core_type = #tpu.core_type<tc>, window_params = [{transform_indices = @transform_0, window_bounds = array<i64: 8, 128>}, {transform_indices = @transform_1, window_bounds = array<i64: 8, 128>}, {transform_indices = @transform_2, window_bounds = array<i64: 1, 8, 128>}]} {
    %c0 = arith.constant 0 : index
    %c0_0 = arith.constant 0 : index
    %0 = vector.load %arg1[%c0, %c0_0] : memref<8x128xf32, #tpu.memory_space<vmem>>, vector<8x128xf32>
    %c0_1 = arith.constant 0 : index
    %c0_2 = arith.constant 0 : index
    %1 = vector.load %arg2[%c0_1, %c0_2] : memref<8x128xf32, #tpu.memory_space<vmem>>, vector<8x128xf32>
    %2 = arith.subf %0, %1 : vector<8x128xf32>
    %cst = arith.constant 5.000000e-01 : f32
    %3 = vector.broadcast %cst : f32 to vector<8x128xf32>
    %4 = arith.mulf %3, %2 : vector<8x128xf32>
    %5 = math.tanh %4 : vector<8x128xf32>
    %6 = arith.mulf %2, %5 : vector<8x128xf32>
    %7 = vector.shape_cast %6 : vector<8x128xf32> to vector<1x8x128xf32>
    %cst_3 = arith.constant dense<0.000000e+00> : vector<8x128xf32>
    %8 = vector.multi_reduction <add>, %7, %cst_3 [0] : vector<1x8x128xf32> to vector<8x128xf32>
    %9 = vector.shape_cast %8 : vector<8x128xf32> to vector<1x8x128xf32>
    %c0_4 = arith.constant 0 : index
    %c0_5 = arith.constant 0 : index
    %c0_6 = arith.constant 0 : index
    %10 = vector.load %arg3[%c0_4, %c0_5, %c0_6] : memref<1x8x128xf32, #tpu.memory_space<vmem>>, vector<1x8x128xf32>
    tpu.vector_store %arg3[%c0_4, %c0_5, %c0_6], %9 {strides = array<i32>} : memref<1x8x128xf32, #tpu.memory_space<vmem>>, vector<1x8x128xf32>,
    return
  }
  func.func @transform_0(%arg0: i32) -> (i32, i32) {
    %c0_i32 = arith.constant 0 : i32
    %c0_i32_0 = arith.constant 0 : i32
    return %arg0, %c0_i32 : i32, i32
  }
  func.func @transform_1(%arg0: i32) -> (i32, i32) {
    %c0_i32 = arith.constant 0 : i32
    %c0_i32_0 = arith.constant 0 : i32
    return %arg0, %c0_i32 : i32, i32
  }
  func.func @transform_2(%arg0: i32) -> (i32, i32, i32) {
    %c0_i32 = arith.constant 0 : i32
    %c0_i32_0 = arith.constant 0 : i32
    %c0_i32_1 = arith.constant 0 : i32
    return %arg0, %c0_i32, %c0_i32_0 : i32, i32, i32
  }
}

</mosaic_0001>

<bundles_post_ra>
// kernel: tpu_custom_call.1
= control target key start
LH: loop header
LB: loop body
LE: loop exit
PB: predicated region body
PF: predicated region fallthrough
CT: control target
= control target key end

     0   :  { %7 = vsyncpa [#allocation3], 0  ;;  %s717_s0 = inlined_call_operand.hbm [shape: f32[16,128], index: 0, kind: input, shape index: {}]   ;;  %s718_s1 = inlined_call_operand.hbm [shape: f32[16,128], index: 1, kind: input, shape index: {}]   ;;  %s719_s2 = inlined_call_operand.hbm [shape: f32[2,8,128], index: 2, kind: output, shape index: {}]  }
   0x1   :  { %9 = vsyncpa [#allocation3 + $0x1], 0 }
   0x2   :  { %10 = vsyncpa [#allocation6], 0 }
   0x3   :  { %12 = vsyncpa [#allocation6 + $0x1], 0 }
   0x4   :  { %13 = vsyncpa [#allocation4], 0 }
   0x5   :  { %15 = vsyncpa [#allocation4 + $0x1], 0  ;;  %s523_s9 = smov 0   ;;  %s525_s10 = smov 0  }
   0x6   :  { %s527_s11 = smov 0   ;;  %s529_s12 = smov 0  }
   0x7 LB: > { %s544_s13 = sadd.s32 4294967295, %s503_s12   ;;  %s311_s14 = sadd.s32 4294967294, %s503_s12   ;;  %s503_s12 = sphi %s529_s12, %s738_s12   ;;  %s499_s11 = sphi %s527_s11, %s737_s11   ;;  %s495_s10 = sphi %s525_s10, %s736_s10   ;;  %s491_s9 = sphi %s523_s9, %s735_s9  }
   0x8   : > { %s548_s15 = sadd.s32 1, %s503_s12   ;;  %s28_s16 = sadd.s32 1, %s499_s11 }
   0x9   : > { %s25_s17 = ssub.s32 %s503_s12, %s548_s15  ;;  %p35_p0 = scmp.ne.s32.totalorder %s499_s11, %s495_s10 }
   0xa   : > { %p26_p1 = scmp.eq.s32.totalorder %s25_s17, 0  ;;  %p36_p2 = scmp.eq.s32.totalorder %s503_s12, 0 }
   0xb   : > { %p41_p3 = scmp.ne.s32.totalorder %s495_s10, %s491_s9  ;;  %p42_p4 = scmp.eq.s32.totalorder %s544_s13, 0 }
   0xc   : > { %s560_s18 = scalar_select %p26_p1, %s499_s11, %s28_s16  }
   0xd   : > { %p562_p5 = por %p36_p2, %p35_p0  ;;  %p566_p6 = por %p42_p4, %p41_p3 }
   0xe   : > { %p91_p7 = scmp.eq.s32.totalorder %s544_s13, 1  ;;  %p97_p8 = scmp.eq.s32.totalorder %s311_s14, 1 }
   0xf   : > { %s723_s20 = scalar_select %p566_p6, 1, 0 }
  0x10   : > { %p343_p10 = scmp.lt.s32.totalorder %s503_s12, 2  ;;  %p573_p11 = por %p91_p7, %p35_p0 }
  0x11   : > { %p577_p12 = por %p97_p8, %p41_p3  ;;  %s582_s23 = sand.u32 1, %s499_s11  }
  0x12   : > { %s724_s21 = scalar_select %p573_p11, 1, 0 }
  0x13   : > { %s725_s22 = scalar_select %p577_p12, 1, 0 }
  0x14   : > { %s315_s24 = sshll.u32 %s503_s12, 7  ;;  %s314_s25 = sshll.u32 %s582_s23, 3 }
  0x15   : > { %s591_s28 = scalar_lea.hbm %s717_s0, %s315_s24  ;;  %s121_s29 = scalar_lea.vmem [#allocation2], %s314_s25 }
  0x16   : > { %s128_s30 = sshll.u32 %s121_s29, 4  ;;  %p597_p13 = pnand %p343_p10, %p562_p5  ;;  %s601_s30 = int_to_ptr.vmem [resolvable:$true] %s128_s30 }
  0x17   : > { %s118_s4 = scalar_lea.sflag [#allocation3], %s582_s23  ;;  %s379_s5 = scalar_lea.hbm %s591_s28, 128 }
  0x18   : > { %p380_p2 = scmp.ne.s32.totalorder %s591_s28, %s379_s5  ;;  %p381_p3 = pneg %p597_p13 }
  0x19   : > { %s384_s8 = scalar_lea.hbm %s717_s0, 256  ;;  %p385_p5 = scmp.lt.s32.totalorder %s591_s28, %s717_s0 }
  0x1a   : > { %p382_p4 = pnand %p381_p3, %p380_p2  ;;  %p386_p8 = scmp.lt.s32.totalorder %s384_s8, %s379_s5 }
  0x1c   : > { %p383_p7 = pneg %p382_p4  ;;  %p387_p10 = por %p386_p8, %p385_p5 }
  0x1e   : > { %p388_p9 = pnand %p387_p10, %p383_p7 }
  0x20   : > { %391 = shalt.err (!%p388_p9)
}
  0x21   : > { %s392_s17 = scalar_lea.vmem %s601_s30, 128  ;;  %s505_s19 = smov [#allocation2]  }
  0x22   : > { %p393_p0 = scmp.ne.s32.totalorder %s601_s30, %s392_s17  ;;  %s397_s26 = sshll.u32 %s505_s19, 4  ;;  %s398_s26 = int_to_ptr.vmem [resolvable:$false] %s397_s26 }
  0x23   : > { %s399_s27 = scalar_lea.vmem %s398_s26, 256  ;;  %p400_p1 = scmp.lt.s32.totalorder %s601_s30, %s398_s26 }
  0x24   : > { %p395_p2 = pnand %p393_p0, %p381_p3  ;;  %p401_p12 = scmp.lt.s32.totalorder %s399_s27, %s392_s17 }
  0x26   : > { %p396_p4 = pneg %p395_p2  ;;  %p402_p11 = por %p401_p12, %p400_p1 }
  0x28   : > { %p403_p5 = pnand %p402_p11, %p396_p4 }
  0x2a   : > { %406 = shalt.err (!%p403_p5)
}
  0x2b   : > { %335 = dma.hbm_to_vmem [thread:$0]  (!%p597_p13), %s591_s28, 128, %s601_s30, %s118_s4  }
  0x2c   : > { %p727_p9 = scmp.lt.s32.totalorder %s503_s12, 3  ;;  %p728_p0 = scmp.ge.s32.totalorder %s503_s12, 1 }
  0x2d   : > { %s643_s7 = scalar_lea.hbm %s718_s1, %s315_s24  ;;  %s139_s8 = scalar_lea.vmem [#allocation5], %s314_s25 }
  0x2e   : > { %p634_p7 = pnand %p728_p0, %p727_p9  ;;  %s146_s14 = sshll.u32 %s139_s8, 4  ;;  %s147_s14 = int_to_ptr.vmem [resolvable:$true] %s146_s14 }
  0x2f   : > { %s136_s28 = scalar_lea.sflag [#allocation6], %s582_s23  ;;  %s407_s30 = scalar_lea.hbm %s643_s7, 128 }
  0x30   : > { %s729_s29 = scalar_select %p634_p7, 1, 0 }
  0x31   : > { %p408_p11 = scmp.ne.s32.totalorder %s643_s7, %s407_s30  ;;  %s412_s17 = scalar_lea.hbm %s718_s1, 256 }
  0x32   : > { %p413_p8 = scmp.lt.s32.totalorder %s643_s7, %s718_s1  ;;  %p414_p10 = scmp.lt.s32.totalorder %s412_s17, %s407_s30 }
  0x33   : > { %p410_p12 = pnand %p408_p11, %p381_p3 }
  0x34   : > { %p415_p2 = por %p414_p10, %p413_p8 }
  0x35   : > { %p411_p1 = pneg %p410_p12 }
  0x37   : > { %p416_p4 = pnand %p415_p2, %p411_p1 }
  0x39   : > { %419 = shalt.err (!%p416_p4)
}
  0x3a   : > { %s420_s25 = scalar_lea.vmem %s147_s14, 128  ;;  %s506_s23 = smov [#allocation5]  }
  0x3b   : > { %p421_p5 = scmp.ne.s32.totalorder %s147_s14, %s420_s25  ;;  %s425_s26 = sshll.u32 %s506_s23, 4  ;;  %s426_s26 = int_to_ptr.vmem [resolvable:$false] %s425_s26 }
  0x3c   : > { %s427_s27 = scalar_lea.vmem %s426_s26, 256  ;;  %p428_p11 = scmp.lt.s32.totalorder %s147_s14, %s426_s26 }
  0x3d   : > { %p423_p9 = pnand %p421_p5, %p381_p3  ;;  %p429_p12 = scmp.lt.s32.totalorder %s427_s27, %s420_s25 }
  0x3f   : > { %p424_p0 = pneg %p423_p9  ;;  %p430_p6 = por %p429_p12, %p428_p11 }
  0x41   : > { %p431_p7 = pnand %p430_p6, %p424_p0 }
  0x43   : > { %434 = shalt.err (!%p431_p7)
}
  0x44   : > { %338 = dma.hbm_to_vmem [thread:$0]  (!%p597_p13), %s643_s7, 128, %s147_s14, %s136_s28  }
  0x45   : > { %p730_p1 = scmp.ne.s32.totalorder %s729_s29, 0 }
  0x46   : > { %s669_s5 = sand.u32 (!%p730_p1), 1, %s495_s10   ;;  %p731_p3 = scmp.ne.s32.totalorder (!%p730_p1), %s723_s20, 0 }
  0x47   : > { %155 = sbr.rel (%p730_p1) target bundleno = 113 (0x71), region = 28  ;;  %s319_s6 = sshll.u32 (!%p730_p1), %s669_s5, 3 }
  0x48   : > { %s158_s8 = scalar_lea.sflag (!%p730_p1), [#allocation3], %s669_s5  ;;  %s161_s30 = scalar_lea.vmem (!%p730_p1), [#allocation2], %s319_s6 }
  0x4c   : > { %478 = dma.done.wait (%p731_p3), %s158_s8, 128  }
  0x4d   : > { %480 = vsyncadd (%p731_p3), %s158_s8, 4294967168  ;;  %s167_s3 = scalar_lea.sflag [#allocation6], %s669_s5  ;;  %s170_s7 = scalar_lea.vmem [#allocation5], %s319_s6 }
  0x4e   : > { %482 = dma.done.wait (%p731_p3), %s167_s3, 128  }
  0x4f   : > { %484 = vsyncadd (%p731_p3), %s167_s3, 4294967168  ;;  %v196_v0 = vld [vmem:[%s161_s30] sm:$0xff]  ;;  %v197_v1 = vld [vmem:[%s170_s7] sm:$0xff]  ;;  %s195_s29 = scalar_lea.vmem [#allocation7], %s319_s6  ;;  %s323_s28 = sshll.u32 %s544_s13, 7 }
  0x50   : > { %v198_v2 = vsub.f32 %v196_v0, %v197_v1  ;;  %s218_s14 = sshll.u32 %s195_s29, 4  ;;  %s216_s17 = scalar_lea.hbm %s719_s2, %s323_s28  ;;  %s219_s14 = int_to_ptr.vmem [resolvable:$true] %s218_s14 }
  0x51   : > { %s205_s20 = scalar_lea.sflag [#allocation4], %s669_s5  ;;  %s435_s24 = scalar_lea.vmem %s219_s14, 128 }
  0x52   : > { %v199_v3 = vmul.f32 0.5, %v198_v2  ;;  %p436_p6 = scmp.ne.s32.totalorder %s219_s14, %s435_s24  ;;  %p732_p13 = scmp.ne.s32.totalorder %s724_s21, 0 }
  0x53   : > { %s507_s19 = smov [#allocation7]  }
  0x54   : > { %377 = vtanh.f32 %v199_v3  ;;  %p437_p7 = pnand %p436_p6, %p732_p13  ;;  %s439_s25 = sshll.u32 %s507_s19, 4  ;;  %s440_s25 = int_to_ptr.vmem [resolvable:$false] %s439_s25 }
  0x55   : > { %s441_s23 = scalar_lea.vmem %s440_s25, 256  ;;  %p442_p10 = scmp.lt.s32.totalorder %s219_s14, %s440_s25 }
  0x56   : > { %p438_p8 = pneg %p437_p7  ;;  %p443_p2 = scmp.lt.s32.totalorder %s441_s23, %s435_s24 }
  0x58   : > { %p444_p4 = por %p443_p2, %p442_p10 }
  0x5a   : > { %p445_p5 = pnand %p444_p4, %p438_p8 }
  0x61   : > { %v378_v4 = vpop.eup %377 }
  0x62   : > { %v201_v5 = vmul.f32 %v378_v4, %v198_v2 }
  0x64   : > { %203 = vst [vmem:[%s195_s29] sm:$0xff] %v201_v5 }
  0x65   : > { %448 = shalt.err (!%p445_p5)
}
  0x66   : > { %s449_s13 = scalar_lea.hbm %s216_s17, 128  ;;  %s453_s5 = scalar_lea.hbm %s719_s2, 256 }
  0x67   : > { %p450_p9 = scmp.ne.s32.totalorder %s216_s17, %s449_s13  ;;  %p454_p12 = scmp.lt.s32.totalorder %s216_s17, %s719_s2 }
  0x68   : > { %p455_p1 = scmp.lt.s32.totalorder %s453_s5, %s449_s13 }
  0x69   : > { %p451_p0 = pnand %p450_p9, %p732_p13 }
  0x6a   : > { %p456_p3 = por %p455_p1, %p454_p12 }
  0x6b   : > { %p452_p11 = pneg %p451_p0 }
  0x6d   : > { %p457_p6 = pnand %p456_p3, %p452_p11 }
  0x6f   : > { %460 = shalt.err (!%p457_p6)
}
  0x70   : > { %330 = dma.vmem_to_hbm [thread:$0]  (%p732_p13), %s219_s14, 128, %s216_s17, %s205_s20  }
  0x71 PF: > { %s230_s30 = sand.u32 1, %s491_s9   ;;  %p733_p7 = scmp.ne.s32.totalorder %s725_s22, 0 }
  0x72   : > { %p734_p8 = scmp.ge.s32.totalorder %s503_s12, 2  ;;  %s231_s3 = scalar_lea.sflag [#allocation4], %s230_s30 }
  0x74   : > { %p340_p10 = pnand %p734_p8, %p733_p7 }
  0x76   : > { %p341_p2 = pneg %p340_p10 }
  0x78   : > { %486 = dma.done.wait (%p341_p2), %s231_s3, 128  }
  0x79   : > { %488 = vsyncadd (%p341_p2), %s231_s3, 4294967168  ;;  %p18_p4 = scmp.ge.s32.totalorder %s548_s15, 4   ;;  %s735_s9 = smov %s495_s10 }
  0x7a   : > { %s736_s10 = smov %s499_s11  ;;  %s737_s11 = smov %s560_s18 }
  0x7b   : > { %s738_s12 = smov %s548_s15  ;;  %20 = sbr.rel (!%p18_p4) target bundleno = 7 (0x7), region = 86 }
  0x80   :  { %236 = vsyncpa [#allocation3], 1 }
  0x81   :  { %238 = vsyncpa [#allocation3 + $0x1], 1 }
  0x82   :  { %239 = vsyncpa [#allocation6], 1 }
  0x83   :  { %241 = vsyncpa [#allocation6 + $0x1], 1 }
  0x84   :  { %242 = vsyncpa [#allocation4], 1 }
  0x85   :  { %244 = vsyncpa [#allocation4 + $0x1], 1 }

</bundles_post_ra>
